<compile_context>
chip_gen: v7x
topology: tpu7x:2x2x1
jax: 0.10.0
libtpu: 0.0.40
codegen_flags: <defaults>
</compile_context>

<pallas_src>
import jax
import jax.numpy as jnp
from jax.experimental import pallas as pl
from jax.experimental.pallas import tpu as pltpu

EPS = 1e-5
_SUBLANE = 16  # sublane granularity for bf16 tiles


def _round_up(x, m):
    return (x + m - 1) // m * m


def resblock_kernel(x_ref, halo_ref, wl_ref, wc_ref, wr_ref, w2_ref,
                    b1_ref, b2_ref, o_ref):
    # x_ref   : (1, TL, Cp)    bf16  activation tile, channel-last (channels on lanes)
    # halo_ref: (1, 1, 2, Cp)  bf16  [x[tile_start-1], x[tile_end]] (zeros at sequence ends)
    # wl/wc/wr: (Cp, C2p)      bf16  conv1 taps (l-1, l, l+1), BN1 scale folded
    # w2_ref  : (C2p, Cp)      bf16  1x1 conv weight, BN2 scale folded
    # b1_ref  : (1, C2p) f32 ; b2_ref : (1, Cp) f32   folded biases (conv bias + BN shift)
    # o_ref   : (1, TL, Cp)    output dtype (bf16 by default)
    x = x_ref[0]                                   # (TL, Cp) bf16
    tl, cp = x.shape
    halo = halo_ref[...].reshape(2, cp)            # (2, Cp)  bf16

    # Shifted neighbour rows built in VMEM (1-row sublane shift) -> no extra HBM traffic.
    x_left = jnp.concatenate([halo[0:1, :], x[:tl - 1, :]], axis=0)   # x[l-1]
    x_right = jnp.concatenate([x[1:, :], halo[1:2, :]], axis=0)       # x[l+1]

    # Conv1d(C, 2C, k=3, pad=1) * BN1-scale: three tap matmuls, f32 accumulation on MXU.
    y1 = jnp.dot(x_left, wl_ref[...], preferred_element_type=jnp.float32)
    y1 = y1 + jnp.dot(x, wc_ref[...], preferred_element_type=jnp.float32)
    y1 = y1 + jnp.dot(x_right, wr_ref[...], preferred_element_type=jnp.float32)
    y1 = jnp.maximum(y1 + b1_ref[...], 0.0)        # folded bias + ReLU (f32)

    # Conv1d(2C, C, k=1) * BN2-scale: second MXU matmul.
    y2 = jnp.dot(y1.astype(jnp.bfloat16), w2_ref[...],
                 preferred_element_type=jnp.float32)
    y2 = y2 + b2_ref[...]

    # Residual (bf16 skip path, add in f32), store in the narrow output dtype.
    o_ref[0] = (x.astype(jnp.float32) + y2).astype(o_ref.dtype)


def fold_resblock_params(params, C, Cp, C2p):
    """Fold eval-mode BN into the conv weights and one bias row per conv."""
    (W1, bc1, g1, be1, m1, v1, W2, bc2, g2, be2, m2, v2) = params
    C2 = 2 * C
    s1 = g1 * jax.lax.rsqrt(v1 + EPS)                          # (2C,)
    b1 = s1 * (bc1 - m1) + be1
    s2 = g2 * jax.lax.rsqrt(v2 + EPS)                          # (C,)
    b2 = s2 * (bc2 - m2) + be2

    # conv1 (2C, C, 3) -> three (Cp, C2p) tap slabs [in, out], out-channel scaled
    w1 = jnp.transpose(W1 * s1[:, None, None], (2, 1, 0))      # (3, C, 2C) [tap, in, out]
    w1 = jnp.pad(w1, ((0, 0), (0, Cp - C), (0, C2p - C2))).astype(jnp.bfloat16)
    wl, wc, wr = w1[0], w1[1], w1[2]

    # conv2 (C, 2C, 1) -> (C2p, Cp), out-channel scaled
    w2 = jnp.transpose(W2[:, :, 0] * s2[:, None])              # (2C, C) [in, out]
    w2 = jnp.pad(w2, ((0, C2p - C2), (0, Cp - C))).astype(jnp.bfloat16)

    b1 = jnp.pad(b1, (0, C2p - C2)).reshape(1, C2p).astype(jnp.float32)
    b2 = jnp.pad(b2, (0, Cp - C)).reshape(1, Cp).astype(jnp.float32)
    return wl, wc, wr, w2, b1, b2


def _vmem_limit_bytes():
    # ~3/4 of physical VMEM, capped at 96 MiB: 128 MiB parts (v5e/v6e) -> 96 MiB,
    # 64 MiB-per-TC parts (v7x) -> 48 MiB.  Fall back conservatively if query fails.
    try:
        phys = int(pltpu.get_tpu_info().vmem_capacity_bytes)
    except Exception:
        phys = 64 * 1024 * 1024
    return int(min(max(phys * 3 // 4, 32 * 1024 * 1024), 96 * 1024 * 1024))


def _pick_tl(block_l, N, L, Cp, C2p, out_bytes, vmem_limit):
    # Single-buffered weights + biases (pl.Buffered(1)).
    weight_bytes = (3 * Cp * C2p + C2p * Cp) * 2 + (C2p + Cp) * 4
    budget = max(vmem_limit - weight_bytes - (4 << 20), 1 << 20)
    # Per-row VMEM: x double-buffer (bf16) + shifted copies (bf16) + out double-buffer
    # + f32 conv1 intermediate + its bf16 recast + f32 y2 result.
    per_row = Cp * (2 * 2 + 2 * 2 + 2 * out_bytes + 4) + C2p * (4 + 2)
    tl = min(block_l, max(budget // per_row, _SUBLANE), _round_up(L, _SUBLANE))
    tl = max((tl // _SUBLANE) * _SUBLANE, _SUBLANE)
    # Keep >= 2 parallel grid steps so both TensorCores get work (v7x megacore).
    while tl > _SUBLANE and N * (_round_up(L, tl) // tl) < 2:
        tl = max((tl // (2 * _SUBLANE)) * _SUBLANE, _SUBLANE)
    return tl


def resblock_nlc(x_nlc, folded, *, block_l=512, out_dtype=jnp.bfloat16,
                 vmem_limit_bytes=None):
    """Core ResBlock on channel-last activations.

    x_nlc : (N, Lp0, Cp) bf16, channels zero-padded to a multiple of 128, any sequence
            rows beyond the true length must be zero (needed for the k=3 zero-padding).
    Returns (N, Lp0, Cp) in out_dtype.  Chained ResBlocks should stay in this layout so
    the NCL<->NLC transpose/pad/cast passes are paid only once per model.
    """
    wl, wc, wr, w2, b1, b2 = folded
    N, Lp0, Cp = x_nlc.shape
    C2p = wl.shape[1]
    out_bytes = jnp.dtype(out_dtype).itemsize
    if vmem_limit_bytes is None:
        vmem_limit_bytes = _vmem_limit_bytes()

    TL = _pick_tl(block_l, N, Lp0, Cp, C2p, out_bytes, vmem_limit_bytes)
    Lp = _round_up(Lp0, TL)
    nT = Lp // TL
    xb = x_nlc if Lp == Lp0 else jnp.pad(x_nlc, ((0, 0), (0, Lp - Lp0), (0, 0)))

    # Per-tile halo rows: x[t*TL - 1] (left) and x[(t+1)*TL] (right); zeros past the ends.
    zrow = jnp.zeros((N, 1, Cp), xb.dtype)
    left = jnp.concatenate([zrow, xb[:, TL - 1::TL, :][:, :nT - 1, :]], axis=1)
    right = jnp.concatenate([xb[:, TL::TL, :][:, :nT - 1, :], zrow], axis=1)
    halo = jnp.stack([left, right], axis=2)                    # (N, nT, 2, Cp) bf16

    const = dict(pipeline_mode=pl.Buffered(1))                  # constant-index operands
    out = pl.pallas_call(
        resblock_kernel,
        out_shape=jax.ShapeDtypeStruct((N, Lp, Cp), out_dtype),
        grid=(N, nT),
        in_specs=[
            pl.BlockSpec((1, TL, Cp), lambda n, t: (n, t, 0)),
            pl.BlockSpec((1, 1, 2, Cp), lambda n, t: (n, t, 0, 0)),
            pl.BlockSpec((Cp, C2p), lambda n, t: (0, 0), **const),
            pl.BlockSpec((Cp, C2p), lambda n, t: (0, 0), **const),
            pl.BlockSpec((Cp, C2p), lambda n, t: (0, 0), **const),
            pl.BlockSpec((C2p, Cp), lambda n, t: (0, 0), **const),
            pl.BlockSpec((1, C2p), lambda n, t: (0, 0), **const),
            pl.BlockSpec((1, Cp), lambda n, t: (0, 0), **const),
        ],
        out_specs=pl.BlockSpec((1, TL, Cp), lambda n, t: (n, t, 0)),
        compiler_params=pltpu.CompilerParams(
            dimension_semantics=("parallel", "parallel"),      # disjoint tiles on both axes
            vmem_limit_bytes=int(vmem_limit_bytes),
        ),
    )(xb, halo, wl, wc, wr, w2, b1, b2)
    return out if Lp == Lp0 else out[:, :Lp0, :]


def resblock_pallas(x_ncl, params, *, block_l=512, out_dtype=jnp.bfloat16):
    """PyTorch-compatible interface: x (N, C, L) f32 -> (N, C, L) f32.

    The NCL->NLC transpose / channel pad / bf16 cast happen once here; a stack of
    ResBlocks should call resblock_nlc directly on the padded NLC bf16 activations
    to avoid paying these XLA layout passes per block.
    """
    N, C, L = x_ncl.shape
    Cp = _round_up(C, 128)
    C2p = _round_up(2 * C, 128)
    folded = fold_resblock_params(params, C, Cp, C2p)

    x_nlc = jnp.transpose(x_ncl, (0, 2, 1))                    # (N, L, C)
    x_nlc = jnp.pad(x_nlc, ((0, 0), (0, 0), (0, Cp - C)))      # (N, L, Cp)
    xb = x_nlc.astype(jnp.bfloat16)

    out_nlc = resblock_nlc(xb, folded, block_l=block_l, out_dtype=out_dtype)
    # TODO(synk): if an NCL f32 output is required by a non-fused consumer, the (TL, Cp)
    # tile could be transposed in-kernel (XLU) and stored as (1, Cp, TL) to drop this pass.
    return jnp.transpose(out_nlc[:, :, :C].astype(jnp.float32), (0, 2, 1))


def resblock_ref(x, params):
    """Pure-JAX f32 reference (NCL layout, eval-mode BN)."""
    (W1, bc1, g1, be1, m1, v1, W2, bc2, g2, be2, m2, v2) = params
    dn = ('NCH', 'OIH', 'NCH')

    def bn(y, g, be, m, v):
        return g[None, :, None] * (y - m[None, :, None]) / \
            jnp.sqrt(v[None, :, None] + EPS) + be[None, :, None]

    y = jax.lax.conv_general_dilated(x, W1, (1,), ((1, 1),),
                                     dimension_numbers=dn) + bc1[None, :, None]
    y = jnp.maximum(bn(y, g1, be1, m1, v1), 0.0)
    y = jax.lax.conv_general_dilated(y, W2, (1,), ((0, 0),),
                                     dimension_numbers=dn) + bc2[None, :, None]
    y = bn(y, g2, be2, m2, v2)
    return x + y


if __name__ == "__main__":
    key = jax.random.PRNGKey(0)
    N, C, L = 2, 4, 32
    C2 = 2 * C

    keys = jax.random.split(key, 8)
    x = jax.random.normal(keys[0], (N, C, L), jnp.float32)

    # deterministic parameter init (shapes match nn.Conv1d / nn.BatchNorm1d)
    W1 = 0.1 * jax.random.normal(keys[1], (C2, C, 3), jnp.float32)   # conv1 weight
    bc1 = 0.05 * jax.random.normal(keys[2], (C2,), jnp.float32)      # conv1 bias
    g1 = 1.0 + 0.1 * jax.random.normal(keys[3], (C2,), jnp.float32)  # bn1 gamma
    be1 = 0.1 * jax.random.normal(keys[4], (C2,), jnp.float32)       # bn1 beta
    m1 = jnp.zeros((C2,), jnp.float32)                               # bn1 running_mean
    v1 = jnp.ones((C2,), jnp.float32)                                # bn1 running_var

    W2 = 0.1 * jax.random.normal(keys[5], (C, C2, 1), jnp.float32)   # conv2 weight
    bc2 = 0.05 * jax.random.normal(keys[6], (C,), jnp.float32)       # conv2 bias
    g2 = 1.0 + 0.1 * jax.random.normal(keys[7], (C,), jnp.float32)   # bn2 gamma
    be2 = jnp.zeros((C,), jnp.float32)                               # bn2 beta
    m2 = jnp.zeros((C,), jnp.float32)                                # bn2 running_mean
    v2 = jnp.ones((C,), jnp.float32)                                 # bn2 running_var

    params = (W1, bc1, g1, be1, m1, v1, W2, bc2, g2, be2, m2, v2)

    # The kernel uses bf16 activations/weights on the MXU; compare against a reference
    # fed the bf16-rounded input so the check only carries the small bf16 rounding error.
    x_bf = x.astype(jnp.bfloat16).astype(jnp.float32)
    ref = resblock_ref(x_bf, params)

    # (a) multi-tile path: block_l=16 -> TL=16, grid (2, 2), exercises the halo exchange.
    out_a = jax.block_until_ready(resblock_pallas(x, params, block_l=16))
    assert out_a.shape == (N, C, L)
    assert jnp.allclose(out_a, ref, atol=2e-2, rtol=2e-2), "mismatch (tiled path)"

    # (b) default tile picker (single tile at this size).
    out_b = jax.block_until_ready(resblock_pallas(x, params))
    assert jnp.allclose(out_b, ref, atol=2e-2, rtol=2e-2), "mismatch (default path)"

    # (c) sequence length not a multiple of the tile: exercises zero-padded tail rows.
    L2 = 29
    x2 = x[:, :, :L2]
    ref2 = resblock_ref(x_bf[:, :, :L2], params)
    out_c = jax.block_until_ready(resblock_pallas(x2, params, block_l=16))
    assert out_c.shape == (N, C, L2)
    assert jnp.allclose(out_c, ref2, atol=2e-2, rtol=2e-2), "mismatch (ragged length)"

    print("KERNEL_OK")
</pallas_src>

<mosaic_0001>
module attributes {stable_mosaic.version = 11 : i64} {
  func.func @resblock_kernel(%arg0: i32, %arg1: i32, %arg2: memref<1x16x128xbf16, #tpu.memory_space<vmem>>, %arg3: memref<1x1x2x128xbf16, #tpu.memory_space<vmem>>, %arg4: memref<128x128xbf16, #tpu.memory_space<vmem>>, %arg5: memref<128x128xbf16, #tpu.memory_space<vmem>>, %arg6: memref<128x128xbf16, #tpu.memory_space<vmem>>, %arg7: memref<128x128xbf16, #tpu.memory_space<vmem>>, %arg8: memref<1x128xf32, #tpu.memory_space<vmem>>, %arg9: memref<1x128xf32, #tpu.memory_space<vmem>>, %arg10: memref<1x16x128xbf16, #tpu.memory_space<vmem>>) attributes {dimension_semantics = [#tpu.dimension_semantics<parallel>, #tpu.dimension_semantics<parallel>], iteration_bounds = array<i64: 2, 2>, scalar_prefetch = 0 : i64, scratch_operands = 0 : i64, tpu.core_type = #tpu.core_type<tc>, window_params = [{transform_indices = @transform_0, window_bounds = array<i64: 1, 16, 128>}, {transform_indices = @transform_1, window_bounds = array<i64: 1, 1, 2, 128>}, {pipeline_mode = #tpu.pipeline_mode<synchronous>, transform_indices = @transform_2, window_bounds = array<i64: 128, 128>}, {pipeline_mode = #tpu.pipeline_mode<synchronous>, transform_indices = @transform_3, window_bounds = array<i64: 128, 128>}, {pipeline_mode = #tpu.pipeline_mode<synchronous>, transform_indices = @transform_4, window_bounds = array<i64: 128, 128>}, {pipeline_mode = #tpu.pipeline_mode<synchronous>, transform_indices = @transform_5, window_bounds = array<i64: 128, 128>}, {pipeline_mode = #tpu.pipeline_mode<synchronous>, transform_indices = @transform_6, window_bounds = array<i64: 1, 128>}, {pipeline_mode = #tpu.pipeline_mode<synchronous>, transform_indices = @transform_7, window_bounds = array<i64: 1, 128>}, {transform_indices = @transform_8, window_bounds = array<i64: 1, 16, 128>}]} {
    %c0 = arith.constant 0 : index
    %c0_0 = arith.constant 0 : index
    %c0_1 = arith.constant 0 : index
    %0 = vector.load %arg2[%c0, %c0_0, %c0_1] : memref<1x16x128xbf16, #tpu.memory_space<vmem>>, vector<1x16x128xbf16>
    %1 = vector.shape_cast %0 : vector<1x16x128xbf16> to vector<16x128xbf16>
    %c0_2 = arith.constant 0 : index
    %c0_3 = arith.constant 0 : index
    %c0_4 = arith.constant 0 : index
    %c0_5 = arith.constant 0 : index
    %2 = vector.load %arg3[%c0_2, %c0_3, %c0_4, %c0_5] : memref<1x1x2x128xbf16, #tpu.memory_space<vmem>>, vector<1x1x2x128xbf16>
    %3 = vector.shape_cast %2 : vector<1x1x2x128xbf16> to vector<2x128xbf16>
    %4 = vector.extract_strided_slice %3 {offsets = [0, 0], sizes = [1, 128], strides = [1, 1]} : vector<2x128xbf16> to vector<1x128xbf16>
    %5 = vector.extract_strided_slice %1 {offsets = [0, 0], sizes = [15, 128], strides = [1, 1]} : vector<16x128xbf16> to vector<15x128xbf16>
    %6 = tpu.concatenate %4, %5 in 0 : vector<1x128xbf16>, vector<15x128xbf16> -> vector<16x128xbf16>
    %7 = vector.extract_strided_slice %1 {offsets = [1, 0], sizes = [15, 128], strides = [1, 1]} : vector<16x128xbf16> to vector<15x128xbf16>
    %8 = vector.extract_strided_slice %3 {offsets = [1, 0], sizes = [1, 128], strides = [1, 1]} : vector<2x128xbf16> to vector<1x128xbf16>
    %9 = tpu.concatenate %7, %8 in 0 : vector<15x128xbf16>, vector<1x128xbf16> -> vector<16x128xbf16>
    %c0_6 = arith.constant 0 : index
    %c0_7 = arith.constant 0 : index
    %10 = vector.load %arg4[%c0_6, %c0_7] : memref<128x128xbf16, #tpu.memory_space<vmem>>, vector<128x128xbf16>
    %cst = arith.constant dense<0.000000e+00> : vector<16x128xf32>
    %11 = tpu.matmul %6, %10, %cst {dimension_numbers = #tpu.dot_dimension_numbers<[1], [0], [0], [1], [0, 0, 1, 1], [], []>} : vector<16x128xbf16>, vector<128x128xbf16>, vector<16x128xf32> -> vector<16x128xf32>
    %c0_8 = arith.constant 0 : index
    %c0_9 = arith.constant 0 : index
    %12 = vector.load %arg5[%c0_8, %c0_9] : memref<128x128xbf16, #tpu.memory_space<vmem>>, vector<128x128xbf16>
    %cst_10 = arith.constant dense<0.000000e+00> : vector<16x128xf32>
    %13 = tpu.matmul %1, %12, %cst_10 {dimension_numbers = #tpu.dot_dimension_numbers<[1], [0], [0], [1], [0, 0, 1, 1], [], []>} : vector<16x128xbf16>, vector<128x128xbf16>, vector<16x128xf32> -> vector<16x128xf32>
    %14 = arith.addf %11, %13 : vector<16x128xf32>
    %c0_11 = arith.constant 0 : index
    %c0_12 = arith.constant 0 : index
    %15 = vector.load %arg6[%c0_11, %c0_12] : memref<128x128xbf16, #tpu.memory_space<vmem>>, vector<128x128xbf16>
    %cst_13 = arith.constant dense<0.000000e+00> : vector<16x128xf32>
    %16 = tpu.matmul %9, %15, %cst_13 {dimension_numbers = #tpu.dot_dimension_numbers<[1], [0], [0], [1], [0, 0, 1, 1], [], []>} : vector<16x128xbf16>, vector<128x128xbf16>, vector<16x128xf32> -> vector<16x128xf32>
    %17 = arith.addf %14, %16 : vector<16x128xf32>
    %c0_14 = arith.constant 0 : index
    %c0_15 = arith.constant 0 : index
    %18 = vector.load %arg8[%c0_14, %c0_15] : memref<1x128xf32, #tpu.memory_space<vmem>>, vector<1x128xf32>
    %19 = vector.broadcast %18 : vector<1x128xf32> to vector<16x128xf32>
    %20 = arith.addf %17, %19 : vector<16x128xf32>
    %cst_16 = arith.constant 0.000000e+00 : f32
    %21 = vector.broadcast %cst_16 : f32 to vector<16x128xf32>
    %22 = arith.maximumf %20, %21 : vector<16x128xf32>
    %23 = arith.truncf %22 : vector<16x128xf32> to vector<16x128xbf16>
    %c0_17 = arith.constant 0 : index
    %c0_18 = arith.constant 0 : index
    %24 = vector.load %arg7[%c0_17, %c0_18] : memref<128x128xbf16, #tpu.memory_space<vmem>>, vector<128x128xbf16>
    %cst_19 = arith.constant dense<0.000000e+00> : vector<16x128xf32>
    %25 = tpu.matmul %23, %24, %cst_19 {dimension_numbers = #tpu.dot_dimension_numbers<[1], [0], [0], [1], [0, 0, 1, 1], [], []>} : vector<16x128xbf16>, vector<128x128xbf16>, vector<16x128xf32> -> vector<16x128xf32>
    %c0_20 = arith.constant 0 : index
    %c0_21 = arith.constant 0 : index
    %26 = vector.load %arg9[%c0_20, %c0_21] : memref<1x128xf32, #tpu.memory_space<vmem>>, vector<1x128xf32>
    %27 = vector.broadcast %26 : vector<1x128xf32> to vector<16x128xf32>
    %28 = arith.addf %25, %27 : vector<16x128xf32>
    %29 = arith.extf %1 : vector<16x128xbf16> to vector<16x128xf32>
    %30 = arith.addf %29, %28 : vector<16x128xf32>
    %31 = arith.truncf %30 : vector<16x128xf32> to vector<16x128xbf16>
    %c0_22 = arith.constant 0 : index
    %c0_23 = arith.constant 0 : index
    %c0_24 = arith.constant 0 : index
    %32 = vector.load %arg10[%c0_22, %c0_23, %c0_24] : memref<1x16x128xbf16, #tpu.memory_space<vmem>>, vector<1x16x128xbf16>
    %33 = vector.shape_cast %32 : vector<1x16x128xbf16> to vector<16x128xbf16>
    %34 = vector.shape_cast %31 : vector<16x128xbf16> to vector<1x16x128xbf16>
    tpu.vector_store %arg10[%c0_22, %c0_23, %c0_24], %34 {strides = array<i32>} : memref<1x16x128xbf16, #tpu.memory_space<vmem>>, vector<1x16x128xbf16>,
    return
  }
  func.func @transform_0(%arg0: i32, %arg1: i32) -> (i32, i32, i32) {
    %c0_i32 = arith.constant 0 : i32
    %c0_i32_0 = arith.constant 0 : i32
    return %arg0, %arg1, %c0_i32 : i32, i32, i32
  }
  func.func @transform_1(%arg0: i32, %arg1: i32) -> (i32, i32, i32, i32) {
    %c0_i32 = arith.constant 0 : i32
    %c0_i32_0 = arith.constant 0 : i32
    %c0_i32_1 = arith.constant 0 : i32
    return %arg0, %arg1, %c0_i32, %c0_i32_0 : i32, i32, i32, i32
  }
  func.func @transform_2(%arg0: i32, %arg1: i32) -> (i32, i32) {
    %c0_i32 = arith.constant 0 : i32
    %c0_i32_0 = arith.constant 0 : i32
    %c0_i32_1 = arith.constant 0 : i32
    return %c0_i32, %c0_i32_0 : i32, i32
  }
  func.func @transform_3(%arg0: i32, %arg1: i32) -> (i32, i32) {
    %c0_i32 = arith.constant 0 : i32
    %c0_i32_0 = arith.constant 0 : i32
    %c0_i32_1 = arith.constant 0 : i32
    return %c0_i32, %c0_i32_0 : i32, i32
  }
  func.func @transform_4(%arg0: i32, %arg1: i32) -> (i32, i32) {
    %c0_i32 = arith.constant 0 : i32
    %c0_i32_0 = arith.constant 0 : i32
    %c0_i32_1 = arith.constant 0 : i32
    return %c0_i32, %c0_i32_0 : i32, i32
  }
  func.func @transform_5(%arg0: i32, %arg1: i32) -> (i32, i32) {
    %c0_i32 = arith.constant 0 : i32
    %c0_i32_0 = arith.constant 0 : i32
    %c0_i32_1 = arith.constant 0 : i32
    return %c0_i32, %c0_i32_0 : i32, i32
  }
  func.func @transform_6(%arg0: i32, %arg1: i32) -> (i32, i32) {
    %c0_i32 = arith.constant 0 : i32
    %c0_i32_0 = arith.constant 0 : i32
    %c0_i32_1 = arith.constant 0 : i32
    return %c0_i32, %c0_i32_0 : i32, i32
  }
  func.func @transform_7(%arg0: i32, %arg1: i32) -> (i32, i32) {
    %c0_i32 = arith.constant 0 : i32
    %c0_i32_0 = arith.constant 0 : i32
    %c0_i32_1 = arith.constant 0 : i32
    return %c0_i32, %c0_i32_0 : i32, i32
  }
  func.func @transform_8(%arg0: i32, %arg1: i32) -> (i32, i32, i32) {
    %c0_i32 = arith.constant 0 : i32
    %c0_i32_0 = arith.constant 0 : i32
    return %arg0, %arg1, %c0_i32 : i32, i32, i32
  }
}

</mosaic_0001>

<bundles_post_ra>
// kernel: tpu_custom_call.1
= control target key start
LH: loop header
LB: loop body
LE: loop exit
PB: predicated region body
PF: predicated region fallthrough
CT: control target
= control target key end

     0   :  { %s2260_s0 = inlined_call_operand.hbm [shape: bf16[2,32,128], index: 0, kind: input, shape index: {}]   ;;  %s2261_s1 = inlined_call_operand.hbm [shape: bf16[2,2,2,128], index: 1, kind: input, shape index: {}]   ;;  %s2262_s2 = inlined_call_operand.hbm [shape: bf16[128,128], index: 2, kind: input, shape index: {}]   ;;  %s2263_s3 = inlined_call_operand.hbm [shape: bf16[128,128], index: 3, kind: input, shape index: {}]   ;;  %s2264_s4 = inlined_call_operand.hbm [shape: bf16[128,128], index: 4, kind: input, shape index: {}]   ;;  %s2265_s5 = inlined_call_operand.hbm [shape: bf16[128,128], index: 5, kind: input, shape index: {}]   ;;  %s2266_s6 = inlined_call_operand.vmem [shape: f32[1,128], index: 6, kind: input, shape index: {}]   ;;  %s2267_s7 = inlined_call_operand.vmem [shape: f32[1,128], index: 7, kind: input, shape index: {}]   ;;  %s2268_s8 = inlined_call_operand.hbm [shape: bf16[2,32,128], index: 8, kind: output, shape index: {}]  }
   0x1   :  { %2278 = sst [smem:[#allocation24_spill]] %s2260_s0 }
   0x2   :  { %2279 = sst [smem:[#allocation25_spill]] %s2262_s2 }
   0x3   :  { %2280 = sst [smem:[#allocation26_spill]] %s2263_s3 }
   0x4   :  { %2281 = sst [smem:[#allocation27_spill]] %s2264_s4 }
   0x5   :  { %2282 = sst [smem:[#allocation28_spill]] %s2265_s5 }
   0x6   :  { %2283 = sst [smem:[#allocation29_spill]] %s2266_s6 }
   0x7   :  { %2284 = sst [smem:[#allocation30_spill]] %s2267_s7 }
   0x8   :  { %2285 = sst [smem:[#allocation31_spill]] %s2268_s8 }
   0x9   :  { %13 = vsyncpa [#allocation3], 0 }
   0xa   :  { %15 = vsyncpa [#allocation3 + $0x1], 0 }
   0xb   :  { %16 = vsyncpa [#allocation6], 0 }
   0xc   :  { %18 = vsyncpa [#allocation6 + $0x1], 0 }
   0xd   :  { %19 = vsyncpa [#allocation9], 0 }
   0xe   :  { %20 = vsyncpa [#allocation12], 0 }
   0xf   :  { %21 = vsyncpa [#allocation4], 0 }
  0x10   :  { %23 = vsyncpa [#allocation4 + $0x1], 0  ;;  %s1809_s27 = smov 0   ;;  %s1811_s28 = smov 0  }
  0x11   :  { %s1813_s29 = smov 0   ;;  %s1815_s30 = smov 0  }
  0x12   :  { %s1817_s9 = smov 0   ;;  %s1819_s10 = smov 0  }
  0x13   :  { %s1821_s11 = smov 0   ;;  %s1823_s12 = smov 0  }
  0x14 LB: > { %2286 = sst [smem:[#allocation20_spill]] %s1720_s27  ;;  %s1850_s13 = sadd.s32 4294967295, %s1748_s12   ;;  %s1748_s12 = sphi %s1823_s12, %s29_s12   ;;  %s1744_s11 = sphi %s1821_s11, %s2331_s11   ;;  %s1740_s10 = sphi %s1819_s10, %s2330_s10   ;;  %s1736_s9 = sphi %s1817_s9, %s2329_s9   ;;  %s1732_s30 = sphi %s1815_s30, %s2328_s30   ;;  %s1728_s29 = sphi %s1813_s29, %s2327_s29   ;;  %s1724_s28 = sphi %s1811_s28, %s2326_s28   ;;  %s1720_s27 = sphi %s1809_s27, %s2325_s27  }
  0x15   : > { %2287 = sst [smem:[#allocation21_spill]] %s1736_s9  ;;  %s1110_s14 = sadd.s32 4294967294, %s1748_s12  }
  0x16   : > { %p63_p0 = scmp.ne.s32.totalorder %s1724_s28, %s1720_s27  ;;  %p2271_p1 = scmp.eq.s32.totalorder %s1850_s13, 0 }
  0x17   : > { %p249_p3 = scmp.eq.s32.totalorder %s1110_s14, 3  ;;  %p1111_p5 = scmp.ge.s32.totalorder %s1748_s12, 1 }
  0x18   : > { %p1859_p4 = por %p2271_p1, %p63_p0  ;;  %p256_p7 = scmp.lt.s32.totalorder %s1748_s12, 5 }
  0x19   : > { %p1864_p6 = por %p249_p3, %p63_p0  ;;  %s1750_s18 = smov [#allocation7]  }
  0x1a   : > { %s2288_s15 = scalar_select %p1859_p4, 1, 0 }
  0x1b   : > { %s2289_s16 = scalar_select %p1864_p6, 1, 0 }
  0x1c   : > { %p1869_p8 = pnand %p1111_p5, %p256_p7  ;;  %s268_s19 = sshll.u32 %s1750_s18, 4  ;;  %s1873_s19 = int_to_ptr.vmem [resolvable:$true] %s268_s19 }
  0x1d   : > { %2290 = sst [smem:[#allocation22_spill]] %s2289_s16  ;;  %s1751_s21 = smov [#allocation8]  }
  0x1e   : > { %s2291_s17 = scalar_select %p1869_p8, 1, 0 }
  0x1f   : > { %p1318_p9 = pneg %p1869_p8  ;;  %s281_s22 = sshll.u32 %s1751_s21, 4  ;;  %s1883_s22 = int_to_ptr.vmem [resolvable:$true] %s281_s22 }
  0x20   : > { %s1752_s23 = smov [#allocation10]   ;;  %s2293_s2 = sld [smem:[#allocation25_spill]] }
  0x21   : > { %p1879_p10 = pnand %p1318_p9, %p2271_p1  ;;  %s1885_s24 = sshll.u32 %s1752_s23, 4  ;;  %s295_s24 = int_to_ptr.vmem [resolvable:$true] %s1885_s24 }
  0x23   : > { %p1895_p12 = pneg %p1879_p10 }
  0x26   : > { %s1462_s14 = scalar_lea.hbm %s2293_s2, 1024 }
  0x27   : > { %p1463_p11 = scmp.ne.s32.totalorder %s2293_s2, %s1462_s14  ;;  %p1469_p3 = scmp.lt.u32.totalorder %s1462_s14, %s2293_s2 }
  0x29   : > { %p1465_p13 = pnand %p1895_p12, %p1463_p11 }
  0x2b   : > { %p1466_p0 = pneg %p1465_p13 }
  0x2d   : > { %p1471_p5 = pnand %p1469_p3, %p1466_p0 }
  0x2f   : > { %1474 = shalt.err (!%p1471_p5)
}
  0x30   : > { %s1475_s16 = scalar_lea.vmem %s1873_s19, 1024  ;;  %p1483_p2 = scmp.lt.s32.totalorder %s1873_s19, %s1873_s19 }
  0x31   : > { %p1476_p7 = scmp.ne.s32.totalorder %s1873_s19, %s1475_s16  ;;  %p1484_p6 = scmp.lt.s32.totalorder %s1475_s16, %s1475_s16 }
  0x33   : > { %p1478_p9 = pnand %p1476_p7, %p1895_p12  ;;  %p1485_p11 = por %p1484_p6, %p1483_p2 }
  0x35   : > { %p1479_p1 = pneg %p1478_p9 }
  0x37   : > { %p1486_p13 = pnand %p1485_p11, %p1479_p1 }
  0x39   : > { %1489 = shalt.err (!%p1486_p13)
}
  0x3a   : > { %s2275_s25 = smov 64   ;;  %s2276_s26 = smov 4  }
  0x3b   : > { %1321 = dma.hbm_to_vmem [thread:$0]  (!%p1879_p10), %s2293_s2, 1024, %s1873_s19, [#allocation6], %s2275_s25, %s2275_s25, %s2276_s26  }
  0x3c   : > { %s2295_s3 = sld [smem:[#allocation26_spill]] }
  0x42   : > { %s1490_s16 = scalar_lea.hbm %s2295_s3, 1024 }
  0x43   : > { %p1491_p1 = scmp.ne.s32.totalorder %s2295_s3, %s1490_s16  ;;  %p1497_p0 = scmp.lt.u32.totalorder %s1490_s16, %s2295_s3 }
  0x45   : > { %p1493_p2 = pnand %p1491_p1, %p1895_p12 }
  0x47   : > { %p1494_p6 = pneg %p1493_p2 }
  0x49   : > { %p1499_p3 = pnand %p1497_p0, %p1494_p6 }
  0x4b   : > { %1502 = shalt.err (!%p1499_p3)
}
  0x4c   : > { %s1503_s19 = scalar_lea.vmem %s1883_s22, 1024  ;;  %p1511_p11 = scmp.lt.s32.totalorder %s1883_s22, %s1883_s22 }
  0x4d   : > { %p1504_p5 = scmp.ne.s32.totalorder %s1883_s22, %s1503_s19  ;;  %p1512_p13 = scmp.lt.s32.totalorder %s1503_s19, %s1503_s19 }
  0x4f   : > { %p1506_p7 = pnand %p1504_p5, %p1895_p12  ;;  %p1513_p1 = por %p1512_p13, %p1511_p11 }
  0x51   : > { %p1507_p9 = pneg %p1506_p7 }
  0x53   : > { %p1514_p2 = pnand %p1513_p1, %p1507_p9 }
  0x55   : > { %1517 = shalt.err (!%p1514_p2)
}
  0x56   : > { %1324 = dma.hbm_to_vmem [thread:$0]  (!%p1879_p10), %s2295_s3, 1024, %s1883_s22, [#allocation9], %s2275_s25, %s2275_s25, %s2276_s26  }
  0x57   : > { %s2296_s4 = sld [smem:[#allocation27_spill]] }
  0x5d   : > { %s1518_s14 = scalar_lea.hbm %s2296_s4, 1024 }
  0x5e   : > { %p1519_p6 = scmp.ne.s32.totalorder %s2296_s4, %s1518_s14  ;;  %p1525_p5 = scmp.lt.u32.totalorder %s1518_s14, %s2296_s4 }
  0x60   : > { %p1521_p0 = pnand %p1519_p6, %p1895_p12 }
  0x62   : > { %p1522_p3 = pneg %p1521_p0 }
  0x64   : > { %p1527_p7 = pnand %p1525_p5, %p1522_p3 }
  0x66   : > { %1530 = shalt.err (!%p1527_p7)
}
  0x67   : > { %s1531_s19 = scalar_lea.vmem %s295_s24, 1024  ;;  %p1539_p1 = scmp.lt.s32.totalorder %s295_s24, %s295_s24 }
  0x68   : > { %p1532_p9 = scmp.ne.s32.totalorder %s295_s24, %s1531_s19  ;;  %p1540_p2 = scmp.lt.s32.totalorder %s1531_s19, %s1531_s19 }
  0x6a   : > { %p1534_p11 = pnand %p1532_p9, %p1895_p12  ;;  %p1541_p4 = por %p1540_p2, %p1539_p1 }
  0x6c   : > { %p1535_p13 = pneg %p1534_p11 }
  0x6e   : > { %p1542_p8 = pnand %p1541_p4, %p1535_p13 }
  0x70   : > { %1545 = shalt.err (!%p1542_p8)
}
  0x71   : > { %1327 = dma.hbm_to_vmem [thread:$0]  (!%p1879_p10), %s2296_s4, 1024, %s295_s24, [#allocation9], %s2275_s25, %s2275_s25, %s2276_s26  }
  0x72   : > { %s1755_s7 = smov [#allocation11]   ;;  %s2297_s5 = sld [smem:[#allocation28_spill]] }
  0x73   : > { %s307_s8 = sshll.u32 %s1755_s7, 4  ;;  %s308_s8 = int_to_ptr.vmem [resolvable:$true] %s307_s8 }
  0x78   : > { %s1546_s18 = scalar_lea.hbm %s2297_s5, 1024 }
  0x79   : > { %p1547_p4 = scmp.ne.s32.totalorder %s2297_s5, %s1546_s18  ;;  %p1553_p0 = scmp.lt.u32.totalorder %s1546_s18, %s2297_s5 }
  0x7b   : > { %p1549_p8 = pnand %p1547_p4, %p1895_p12 }
  0x7d   : > { %p1550_p6 = pneg %p1549_p8 }
  0x7f   : > { %p1555_p3 = pnand %p1553_p0, %p1550_p6 }
  0x81   : > { %1558 = shalt.err (!%p1555_p3)
}
  0x82   : > { %s1559_s24 = scalar_lea.vmem %s308_s8, 1024  ;;  %p1567_p11 = scmp.lt.s32.totalorder %s308_s8, %s308_s8 }
  0x83   : > { %p1560_p5 = scmp.ne.s32.totalorder %s308_s8, %s1559_s24  ;;  %p1568_p13 = scmp.lt.s32.totalorder %s1559_s24, %s1559_s24 }
  0x85   : > { %p1562_p7 = pnand %p1560_p5, %p1895_p12  ;;  %p1569_p1 = por %p1568_p13, %p1567_p11 }
  0x87   : > { %p1563_p9 = pneg %p1562_p7 }
  0x89   : > { %p1570_p2 = pnand %p1569_p1, %p1563_p9 }
  0x8b   : > { %1573 = shalt.err (!%p1570_p2)
}
  0x8c   : > { %1330 = dma.hbm_to_vmem [thread:$0]  (!%p1879_p10), %s2297_s5, 1024, %s308_s8, [#allocation12], %s2275_s25, %s2275_s25, %s2276_s26  }
  0x8d   : > { %s38_s27 = sadd.s32 1, %s1740_s10  ;;  %s41_s20 = sadd.s32 1, %s1744_s11 }
  0x8e   : > { %p39_p12 = scmp.ge.s32.totalorder %s38_s27, 2  ;;  %s50_s7 = sadd.s32 1, %s1728_s29 }
  0x8f   : > { %p57_p4 = scmp.ne.s32.totalorder %s1728_s29, %s1724_s28  ;;  %p58_p8 = scmp.eq.s32.totalorder %s1748_s12, 0 }
  0x90   : > { %s2333_s27 = smov (%p39_p12, %s38_s27), 0  ;;  %s2335_s20 = smov (!%p39_p12, %s41_s20), %s1744_s11 }
  0x91   : > { %s46_s9 = ssub.s32 %s1740_s10, %s2333_s27  ;;  %p1999_p6 = por %p58_p8, %p57_p4 }
  0x92   : > { %p43_p10 = scmp.ge.s32.totalorder %s2335_s20, 2  ;;  %p2299_p0 = scmp.eq.s32.totalorder %s1850_s13, 3 }
  0x93   : > { %p1346_p5 = scmp.lt.s32.totalorder %s1748_s12, 4  ;;  %s2011_s18 = sand.u32 1, %s1728_s29  }
  0x94   : > { %p2005_p3 = por %p2299_p0, %p57_p4  ;;  %s2337_s20 = smov (%p43_p10, %s2335_s20), 0 }
  0x95   : > { %2301 = sst [smem:[#allocation23_spill]] %s2337_s20  ;;  %s1117_s21 = sshll.u32 %s2011_s18, 3 }
  0x96   : > { %s45_s23 = ssub.s32 %s1744_s11, %s2337_s20  ;;  %s1118_s19 = sshll.u32 %s1740_s10, 1 }
  0x97   : > { %s47_s16 = sor.u32 %s46_s9, %s45_s23  ;;  %s1119_s24 = sshll.u32 %s1744_s11, 2 }
  0x98   : > { %p48_p7 = scmp.eq.s32.totalorder %s47_s16, 0  ;;  %s337_s22 = sadd.s32 %s1119_s24, %s1118_s19 }
  0x99   : > { %s331_s6 = scalar_lea.vmem [#allocation2], %s1117_s21  ;;  %s1120_s2 = sshll.u32 %s337_s22, 6 }
  0x9a   : > { %s340_s25 = sshll.u32 %s331_s6, 4  ;;  %s2302_s0 = sld [smem:[#allocation24_spill]]  ;;  %s2023_s25 = int_to_ptr.vmem [resolvable:$true] %s340_s25 }
  0x9b   : > { %s2021_s26 = scalar_select %p48_p7, %s1728_s29, %s50_s7  }
  0x9c   : > { %p2034_p9 = pnand %p1346_p5, %p1999_p6  ;;  %s350_s7 = sand.u32 1, %s1748_s12  }
  0x9d   : > { %s328_s21 = scalar_lea.sflag [#allocation3], %s2011_s18 }
  0x9e   : > { %p1576_p13 = pneg %p2034_p9 }
  0xa0   : > { %s2028_s5 = scalar_lea.hbm %s2302_s0, %s1120_s2  ;;  %s1579_s4 = scalar_lea.hbm %s2302_s0, 512 }
  0xa1   : > { %s1574_s23 = scalar_lea.hbm %s2028_s5, 128  ;;  %p1580_p12 = scmp.lt.u32.totalorder %s2028_s5, %s2302_s0 }
  0xa2   : > { %p1575_p11 = scmp.ne.s32.totalorder %s2028_s5, %s1574_s23  ;;  %p1581_p4 = scmp.lt.u32.totalorder %s1579_s4, %s1574_s23 }
  0xa3   : > { %p1583_p6 = scmp.lt.u32.totalorder %s1574_s23, %s2028_s5 }
  0xa4   : > { %p1577_p1 = pnand %p1576_p13, %p1575_p11  ;;  %p1582_p8 = por %p1581_p4, %p1580_p12 }
  0xa6   : > { %p1578_p2 = pneg %p1577_p1  ;;  %p1584_p10 = por %p1583_p6, %p1582_p8 }
  0xa8   : > { %p1585_p0 = pnand %p1584_p10, %p1578_p2 }
  0xaa   : > { %1588 = shalt.err (!%p1585_p0)
}
  0xab   : > { %s1589_s19 = scalar_lea.vmem %s2023_s25, 128  ;;  %s1756_s24 = smov [#allocation2]  }
  0xac   : > { %p1590_p5 = scmp.ne.s32.totalorder %s2023_s25, %s1589_s19  ;;  %s1594_s22 = sshll.u32 %s1756_s24, 4  ;;  %s1595_s22 = int_to_ptr.vmem [resolvable:$false] %s1594_s22 }
  0xad   : > { %s1596_s6 = scalar_lea.vmem %s1595_s22, 256  ;;  %p1597_p1 = scmp.lt.s32.totalorder %s2023_s25, %s1595_s22 }
  0xae   : > { %p1592_p7 = pnand %p1590_p5, %p1576_p13  ;;  %p1598_p12 = scmp.lt.s32.totalorder %s1596_s6, %s1589_s19 }
  0xb0   : > { %p1593_p11 = pneg %p1592_p7  ;;  %p1599_p4 = por %p1598_p12, %p1597_p1 }
  0xb2   : > { %p1600_p8 = pnand %p1599_p4, %p1593_p11 }
  0xb4   : > { %1603 = shalt.err (!%p1600_p8)
}
  0xb5   : > { %s2304_s23 = smov 4   ;;  %s2305_s2 = smov 64  }
  0xb6   : > { %1334 = dma.hbm_to_vmem [thread:$0]  (!%p2034_p9), %s2028_s5, 128, %s2023_s25, %s328_s21, %s2305_s2, %s2305_s2, %s2304_s23  }
  0xb7   : > { %s1121_s3 = sshll.u32 %s1744_s11, 1  ;;  %s353_s4 = scalar_lea.vmem [#allocation5], %s2011_s18 }
  0xb8   : > { %s362_s14 = sshll.u32 %s353_s4, 4  ;;  %s358_s16 = sadd.s32 %s1740_s10, %s1121_s3  ;;  %s2073_s14 = int_to_ptr.vmem [resolvable:$true] %s362_s14 }
  0xb9   : > { %s1122_s19 = sshll.u32 %s358_s16, 4  ;;  %s351_s0 = scalar_lea.sflag [#allocation6], %s350_s7 }
  0xba   : > { %s360_s6 = scalar_lea.hbm %s2261_s1, %s1122_s19  ;;  %s1609_s18 = scalar_lea.hbm %s2261_s1, 64 }
  0xbb   : > { %s1604_s20 = scalar_lea.hbm %s360_s6, 16  ;;  %p1610_p0 = scmp.lt.u32.totalorder %s360_s6, %s2261_s1 }
  0xbc   : > { %p1605_p2 = scmp.ne.s32.totalorder %s360_s6, %s1604_s20  ;;  %p1611_p5 = scmp.lt.u32.totalorder %s1609_s18, %s1604_s20 }
  0xbd   : > { %p1613_p11 = scmp.lt.u32.totalorder %s1604_s20, %s360_s6 }
  0xbe   : > { %p1607_p6 = pnand %p1605_p2, %p1576_p13  ;;  %p1612_p7 = por %p1611_p5, %p1610_p0 }
  0xc0   : > { %p1608_p10 = pneg %p1607_p6  ;;  %p1614_p1 = por %p1613_p11, %p1612_p7 }
  0xc2   : > { %p1615_p12 = pnand %p1614_p1, %p1608_p10 }
  0xc4   : > { %1618 = shalt.err (!%p1615_p12)
}
  0xc5   : > { %s1619_s7 = scalar_lea.vmem %s2073_s14, 16  ;;  %s1757_s2 = smov [#allocation5]  }
  0xc6   : > { %p1620_p4 = scmp.ne.s32.totalorder %s2073_s14, %s1619_s7  ;;  %s1624_s3 = sshll.u32 %s1757_s2, 4  ;;  %s1625_s3 = int_to_ptr.vmem [resolvable:$false] %s1624_s3 }
  0xc7   : > { %s1626_s4 = scalar_lea.vmem %s1625_s3, 32  ;;  %p1627_p6 = scmp.lt.s32.totalorder %s2073_s14, %s1625_s3 }
  0xc8   : > { %p1622_p8 = pnand %p1620_p4, %p1576_p13  ;;  %p1628_p0 = scmp.lt.s32.totalorder %s1626_s4, %s1619_s7 }
  0xca   : > { %p1623_p2 = pneg %p1622_p8  ;;  %p1629_p5 = por %p1628_p0, %p1627_p6 }
  0xcc   : > { %p1630_p7 = pnand %p1629_p5, %p1623_p2 }
  0xce   : > { %1633 = shalt.err (!%p1630_p7)
}
  0xcf   : > { %1337 = dma.hbm_to_vmem [thread:$0]  (!%p2034_p9), %s360_s6, 16, %s2073_s14, %s351_s0  }
  0xd0   : > { %p2306_p10 = scmp.ne.s32.totalorder %s2291_s17, 0 }
  0xd1   : > { %s2101_s20 = sand.u32 (!%p2306_p10), 1, %s1724_s28   ;;  %p2307_p13 = scmp.ne.s32.totalorder (!%p2306_p10), %s2288_s15, 0 }
  0xd2   : > { %371 = sbr.rel (%p2306_p10) target bundleno = 753 (0x2f1), region = 52  ;;  %s1124_s16 = sshll.u32 (!%p2306_p10), %s2101_s20, 3 }
  0xd3   : > { %s374_s19 = scalar_lea.sflag (!%p2306_p10), [#allocation3], %s2101_s20  ;;  %s2107_s24 = scalar_lea.vmem (!%p2306_p10), [#allocation2], %s1124_s16 }
  0xd9   : > { %1695 = dma.done.wait (%p2307_p13), %s374_s19, 128  }
  0xda   : > { %1697 = vsyncadd (%p2307_p13), %s374_s19, 4294967168  ;;  %s382_s0 = sand.u32 1, %s1850_s13   ;;  %s385_s9 = scalar_lea.vmem [#allocation5], %s2101_s20 }
  0xdb   : > { %s383_s17 = scalar_lea.sflag [#allocation6], %s382_s0 }
  0xdc   : > { %1699 = dma.done.wait (%p2307_p13), %s383_s17, 16  }
  0xdd   : > { %1701 = vsyncadd (%p2307_p13), %s383_s17, 4294967280  ;;  %p2308_p9 = scmp.eq.s32.totalorder %s1850_s13, 0 }
  0xdf   : > { %1703 = dma.done.wait (%p2308_p9), [#allocation6], 1024   ;;  %p2309_p11 = pmov %p2308_p9 }
  0xe0   : > { %p2310_p1 = pmov %p2308_p9 }
  0xe1   : > { %1705 = vsyncadd (%p2309_p11), [#allocation6], 4294966272 }
  0xe2   : > { %1707 = dma.done.wait (%p2310_p1), [#allocation9], 2048   ;;  %p2311_p12 = pmov %p2310_p1 }
  0xe3   : > { %p2312_p4 = pmov %p2310_p1 }
  0xe4   : > { %1709 = vsyncadd (%p2311_p12), [#allocation9], 4294965248 }
  0xe5   : > { %1711 = dma.done.wait (%p2312_p4), [#allocation12], 1024   ;;  %p2313_p8 = pmov %p2310_p1 }
  0xe6   : > { %v1758_v0 = vmov 0.0   ;;  %vm1759_vm0 = vmmov 0   ;;  %v1427_v1 = vld [vmem:[#allocation8] sm:$0xff]   ;;  %v1429_v3 = vld [vmem:[#allocation8 + $0x8] sm:$0xff]   ;;  %v1431_v5 = vld [vmem:[#allocation8 + $0x10] sm:$0xff]   ;;  %vm457_vm1 = vcmask 1040384   ;;  %v469_v28 = vlaneseq }
  0xe7   : > { %1713 = vsyncadd (%p2313_p8), [#allocation12], 4294966272  ;;  %1216 = vmatprep.subr.bf16.mxu0 %v1758_v0  ;;  %1236 = vmatprep.subr.bf16.mxu1 %v1758_v0  ;;  %v1428_v2 = vld [vmem:[#allocation7] sm:$0xff]   ;;  %v1430_v4 = vld [vmem:[#allocation7 + $0x8] sm:$0xff]   ;;  %vm458_vm2 = vsmask.f32 256 }
  0xe8   : > { %1232 = vmatprep.mubr.msk.bf16.mxu0 %vm1759_vm0, %v1758_v0  ;;  %1252 = vmatprep.mubr.msk.bf16.mxu1 %vm1759_vm0, %v1758_v0  ;;  %v1432_v6 = vld [vmem:[#allocation7 + $0x10] sm:$0xff]   ;;  %v1433_v7 = vld [vmem:[#allocation8 + $0x18] sm:$0xff]   ;;  %v1435_v9 = vld [vmem:[#allocation8 + $0x20] sm:$0xff]   ;;  %v1760_v26 = vmov 1966171168   ;;  %v470_v31 = vshrl.u32 %v469_v28, 7 }
  0xe9   : > { %1217 = vmatpush3.bf16.msra.mxu0 %v1427_v1  ;;  %1237 = vmatpush3.bf16.msra.mxu1 %v1428_v2  ;;  %v1434_v8 = vld [vmem:[#allocation7 + $0x18] sm:$0xff]   ;;  %v1436_v10 = vld [vmem:[#allocation7 + $0x20] sm:$0xff]   ;;  %v1437_v12 = vld [vmem:[#allocation8 + $0x28] sm:$0xff]   ;;  %v467_v27 = vunpack.c.l.s4 %v1760_v26  ;;  %vm483_vm4 = vcmask 1047552   ;;  %vm484_vm5 = vsmask.f32 7424 }
  0xea   : > { %1218 = vmatprep.subr.bf16.mxu0 %v1758_v0  ;;  %1238 = vmatprep.subr.bf16.mxu1 %v1758_v0  ;;  %v2146_v11 = vld [vmem:[%s2107_s24] sm:$0xff]   ;;  %vm2155_vm3 = vmand %vm457_vm1, %vm458_vm2  ;;  %v1445_v24 = vld [vmem:[#allocation10] sm:$0xff]   ;;  %s2316_s13 = sld [smem:[#allocation21_spill]]  ;;  %s2317_s22 = sld [smem:[#allocation29_spill]] }
  0xeb   : > { %v1438_v13 = vld [vmem:[#allocation7 + $0x28] sm:$0xff]   ;;  %v450_v14 = vshrl.u32 %v2146_v11, 16  ;;  %v1439_v15 = vld [vmem:[#allocation8 + $0x30] sm:$0xff]   ;;  %v453_v18 = vshll.u32 %v2146_v11, 16  ;;  %v1441_v20 = vld [vmem:[#allocation8 + $0x38] sm:$0xff]   ;;  %v468_v30 = vunpack.c.0.s8 %v467_v27  ;;  %s1168_s6 = sshll.u32 %s1732_s30, 1  ;;  %v930_v19 = vunpack.c.h.bf16 %v2146_v11 }
  0xec   : > { %v1440_v16 = vld [vmem:[#allocation7 + $0x30] sm:$0xff]   ;;  %v1442_v21 = vld [vmem:[#allocation7 + $0x38] sm:$0xff]   ;;  %v443_v22 = vld [vmem:[%s385_s9] sm:$0x1]  ;;  %s2318_s21 = sld [smem:[#allocation30_spill]]  ;;  %s437_s30 = scalar_lea.vmem [#allocation13], %s1124_s16 }
  0xed   : > { %1219 = vmatpush3.bf16.msra.mxu0 %v1429_v3  ;;  %1239 = vmatpush3.bf16.msra.mxu1 %v1430_v4  ;;  %v452_v17 = vrot.slane %v450_v14, 7  ;;  %v1446_v29 = vld [vmem:[#allocation10 + $0x8] sm:$0xff]   ;;  %v1447_v32 = vld [vmem:[#allocation10 + $0x10] sm:$0xff]   ;;  %v465_v33 = vcombine.low %v443_v22, %v443_v22  ;;  %v471_v34 = vsub.s32 %v468_v30, %v470_v31  ;;  %v1448_v35 = vld [vmem:[#allocation10 + $0x18] sm:$0xff]   ;;  %v461_v41 = vrot.slane %v453_v18, 1  ;;  %s959_s2 = sshll.u32 %s437_s30, 4  ;;  %s2206_s2 = int_to_ptr.vmem [resolvable:$true] %s959_s2 }
  0xee   : > { %1220 = vmatprep.subr.bf16.mxu0 %v1758_v0  ;;  %1240 = vmatprep.subr.bf16.mxu1 %v1758_v0  ;;  %v1449_v37 = vld [vmem:[#allocation10 + $0x20] sm:$0xff]   ;;  %v1450_v39 = vld [vmem:[#allocation10 + $0x28] sm:$0xff]   ;;  %v1451_v40 = vld [vmem:[#allocation10 + $0x30] sm:$0xff]   ;;  %s2319_s19 = sld [smem:[#allocation31_spill]]  ;;  %s944_s0 = scalar_lea.sflag [#allocation4], %s2101_s20 }
  0xef   : > { %v455_v23 = vor.u32 %v453_v18, %v452_v17  ;;  %v472_v36 = vrot.slane %v465_v33, %v471_v34  ;;  %v1452_v43 = vld [vmem:[#allocation10 + $0x38] sm:$0xff]   ;;  %v462_v44 = vor.u32 %v461_v41, %v450_v14  ;;  %vm485_vm6 = vmand %vm483_vm4, %vm484_vm5  ;;  %v1453_v47 = vld [vmem:[#allocation11] sm:$0xff]   ;;  %v929_v17 = vunpack.c.l.bf16 %v2146_v11  ;;  %s1634_s17 = scalar_lea.vmem %s2206_s2, 128  ;;  %s1761_s16 = smov [#allocation13]  }
  0xf0   : > { %v1454_v48 = vld [vmem:[#allocation11 + $0x8] sm:$0xff]   ;;  %v1455_v49 = vld [vmem:[#allocation11 + $0x10] sm:$0xff]   ;;  %v1456_v50 = vld [vmem:[#allocation11 + $0x18] sm:$0xff]   ;;  %s1169_s5 = sshll.u32 %s2316_s13, 2  ;;  %p1635_p2 = scmp.ne.s32.totalorder %s2206_s2, %s1634_s17 }
  0xf1   : > { %1221 = vmatpush3.bf16.msra.mxu0 %v1431_v5  ;;  %1241 = vmatpush3.bf16.msra.mxu1 %v1432_v6  ;;  %v460_v25 = vsel %vm2155_vm3, %v443_v22, %v455_v23  ;;  %v473_v38 = vcombine.low %v472_v36, %v472_v36  ;;  %v1457_v51 = vld [vmem:[#allocation11 + $0x20] sm:$0xff]   ;;  %v1458_v52 = vld [vmem:[#allocation11 + $0x28] sm:$0xff]   ;;  %v1459_v53 = vld [vmem:[#allocation11 + $0x30] sm:$0xff]   ;;  %s956_s23 = sadd.s32 %s1169_s5, %s1168_s6  ;;  %s1638_s9 = sshll.u32 %s1761_s16, 4  ;;  %s1639_s9 = int_to_ptr.vmem [resolvable:$false] %s1638_s9 }
  0xf2   : > { %1222 = vmatprep.subr.bf16.mxu0 %v1758_v0  ;;  %1242 = vmatprep.subr.bf16.mxu1 %v1758_v0  ;;  %v1460_v54 = vld [vmem:[#allocation11 + $0x38] sm:$0xff]   ;;  %v1155_v3 = vld [vmem:[%s2317_s22] ss:$0 sm:$0xff]  ;;  %s1170_s7 = sshll.u32 %s956_s23, 6  ;;  %p1636_p6 = pnand %p1635_p2, %p2005_p3 }
  0xf3   : > { %v480_v42 = vrot.slane %v473_v38, %v471_v34  ;;  %v1156_v14 = vld [vmem:[%s2318_s21] ss:$0 sm:$0xff]  ;;  %s1640_s13 = scalar_lea.vmem %s1639_s9, 256  ;;  %p1641_p5 = scmp.lt.s32.totalorder %s2206_s2, %s1639_s9 }
  0xf4   : > { %s2204_s24 = scalar_lea.hbm %s2319_s19, %s1170_s7  ;;  %p1637_p0 = pneg %p1636_p6 }
  0xf5   : > { %1223 = vmatpush3.bf16.msra.mxu0 %v1433_v7  ;;  %1243 = vmatpush3.bf16.msra.mxu1 %v1434_v8  ;;  %v481_v45 = vcombine.low %v480_v42, %v480_v42  ;;  %p1642_p7 = scmp.lt.s32.totalorder %s1640_s13, %s1634_s17 }
  0xf6   : > { %1224 = vmatprep.subr.bf16.mxu0 %v1758_v0  ;;  %1244 = vmatprep.subr.bf16.mxu1 %v1758_v0 }
  0xf7   : > { %v486_v46 = vsel %vm485_vm6, %v462_v44, %v481_v45  ;;  %p1643_p10 = por %p1642_p7, %p1641_p5 }
  0xf9   : > { %1225 = vmatpush3.bf16.msra.mxu0 %v1435_v9  ;;  %1245 = vmatpush3.bf16.msra.mxu1 %v1436_v10  ;;  %p1644_p13 = pnand %p1643_p10, %p1637_p0 }
  0xfa   : > { %1226 = vmatprep.subr.bf16.mxu0 %v1758_v0  ;;  %1246 = vmatprep.subr.bf16.mxu1 %v1758_v0 }
  0xfd   : > { %1227 = vmatpush3.bf16.msra.mxu0 %v1437_v12  ;;  %1247 = vmatpush3.bf16.msra.mxu1 %v1438_v13 }
  0xfe   : > { %1228 = vmatprep.subr.bf16.mxu0 %v1758_v0  ;;  %1248 = vmatprep.subr.bf16.mxu1 %v1758_v0 }
 0x101   : > { %1229 = vmatpush3.bf16.msra.mxu0 %v1439_v15  ;;  %1249 = vmatpush3.bf16.msra.mxu1 %v1440_v16 }
 0x102   : > { %1230 = vmatprep.subr.bf16.mxu0 %v1758_v0  ;;  %1250 = vmatprep.subr.bf16.mxu1 %v1758_v0 }
 0x105   : > { %1231 = vmatpush3.bf16.msra.mxu0 %v1441_v20  ;;  %1251 = vmatpush3.bf16.msra.mxu1 %v1442_v21 }
 0x106   : > { %1256 = vmatprep.subr.bf16.mxu0 %v1758_v0  ;;  %1276 = vmatprep.subr.bf16.mxu1 %v1758_v0 }
 0x108   : > { %1233 = vmatmul.mubr.bf16.vlgmr.msra.gmra.mrb[0].mxu0 %v2146_v11  ;;  %1253 = vmatmul.mubr.bf16.vlgmr.msra.gmra.mrb[0].mxu1 %v460_v25 }
 0x109   : > { %1257 = vmatpush3.bf16.msra.mxu0 %v1445_v24  ;;  %1272 = vmatprep.mubr.msk.bf16.mxu0 %vm1759_vm0, %v1758_v0 }
 0x10a   : > { %1258 = vmatprep.subr.bf16.mxu0 %v1758_v0  ;;  %1292 = vmatprep.mubr.msk.bf16.mxu1 %vm1759_vm0, %v1758_v0 }
 0x10b   : > { %1277 = vmatpush3.bf16.msra.mxu1 %v1453_v47 }
 0x10c   : > { %1278 = vmatprep.subr.bf16.mxu1 %v1758_v0 }
 0x10d   : > { %1259 = vmatpush3.bf16.msra.mxu0 %v1446_v29 }
 0x10e   : > { %1260 = vmatprep.subr.bf16.mxu0 %v1758_v0 }
 0x10f   : > { %1279 = vmatpush3.bf16.msra.mxu1 %v1454_v48 }
 0x110   : > { %1280 = vmatprep.subr.bf16.mxu1 %v1758_v0 }
 0x111   : > { %1261 = vmatpush3.bf16.msra.mxu0 %v1447_v32 }
 0x112   : > { %1262 = vmatprep.subr.bf16.mxu0 %v1758_v0 }
 0x113   : > { %1281 = vmatpush3.bf16.msra.mxu1 %v1455_v49 }
 0x114   : > { %1282 = vmatprep.subr.bf16.mxu1 %v1758_v0 }
 0x115   : > { %1263 = vmatpush3.bf16.msra.mxu0 %v1448_v35 }
 0x116   : > { %1264 = vmatprep.subr.bf16.mxu0 %v1758_v0 }
 0x117   : > { %1283 = vmatpush3.bf16.msra.mxu1 %v1456_v50 }
 0x118   : > { %1284 = vmatprep.subr.bf16.mxu1 %v1758_v0 }
 0x119   : > { %1265 = vmatpush3.bf16.msra.mxu0 %v1449_v37 }
 0x11a   : > { %1266 = vmatprep.subr.bf16.mxu0 %v1758_v0 }
 0x11b   : > { %1285 = vmatpush3.bf16.msra.mxu1 %v1457_v51 }
 0x11c   : > { %1286 = vmatprep.subr.bf16.mxu1 %v1758_v0 }
 0x11d   : > { %1267 = vmatpush3.bf16.msra.mxu0 %v1450_v39 }
 0x11e   : > { %1268 = vmatprep.subr.bf16.mxu0 %v1758_v0 }
 0x11f   : > { %1287 = vmatpush3.bf16.msra.mxu1 %v1458_v52 }
 0x120   : > { %1288 = vmatprep.subr.bf16.mxu1 %v1758_v0 }
 0x121   : > { %1269 = vmatpush3.bf16.msra.mxu0 %v1451_v40 }
 0x122   : > { %1270 = vmatprep.subr.bf16.mxu0 %v1758_v0 }
 0x123   : > { %1289 = vmatpush3.bf16.msra.mxu1 %v1459_v53 }
 0x124   : > { %1290 = vmatprep.subr.bf16.mxu1 %v1758_v0 }
 0x125   : > { %1271 = vmatpush3.bf16.msra.mxu0 %v1452_v43 }
 0x127   : > { %1291 = vmatpush3.bf16.msra.mxu1 %v1460_v54 }
 0x128   : > { %1273 = vmatmul.mubr.bf16.vlgmr.msra.gmra.mrb[4].mxu0 %v486_v46 }
 0x1db   : > { %v602_v55 = vpop.f32.mrb[0].mxu0  ;;  %v691_v56 = vpop.f32.mrb[0].mxu1 }
 0x1dc   : > { %v1234_v57 = vpop.f32.mrb[1].mxu0  ;;  %v692_v58 = vadd.f32 %v691_v56, %v602_v55  ;;  %v1254_v59 = vpop.f32.mrb[1].mxu1 }
 0x1dd   : > { %v605_v60 = vpop.f32.mrb[2].mxu0  ;;  %v694_v61 = vpop.f32.mrb[2].mxu1 }
 0x1de   : > { %v1235_v62 = vpop.f32.mrb[3].mxu0  ;;  %v695_v63 = vadd.f32 %v694_v61, %v605_v60  ;;  %v1255_v1 = vpop.f32.mrb[3].mxu1 }
 0x1fb   : > { %v796_v2 = vpop.f32.mrb[4].mxu0 }
 0x1fc   : > { %v803_v0 = vadd.f32 %v796_v2, %v692_v58  ;;  %v1274_v4 = vpop.f32.mrb[5].mxu0 }
 0x1fd   : > { %v799_v5 = vpop.f32.mrb[6].mxu0 }
 0x1fe   : > { %v812_v6 = vadd.f32 %v1155_v3, %v803_v0  ;;  %v804_v7 = vadd.f32 %v799_v5, %v695_v63  ;;  %v1275_v8 = vpop.f32.mrb[7].mxu0 }
 0x200   : > { %v813_v9 = vadd.f32 %v1155_v3, %v804_v7  ;;  %v814_v10 = vmax.f32 %v812_v6, 0.0 }
 0x202   : > { %v815_v12 = vmax.f32 %v813_v9, 0.0 }
 0x204   : > { %v816_v13 = vpack.c.bf16 %v815_v12, %v814_v10 }
 0x206   : > { %1293 = vmatmul.mubr.bf16.vlgmr.msra.gmra.mrb[4].mxu1 %v816_v13 }
 0x2d9   : > { %v922_v15 = vpop.f32.mrb[4].mxu1 }
 0x2da   : > { %v923_v16 = vadd.f32 %v1156_v14, %v922_v15  ;;  %v1294_v18 = vpop.f32.mrb[5].mxu1 }
 0x2db   : > { %v925_v20 = vpop.f32.mrb[6].mxu1 }
 0x2dc   : > { %v926_v21 = vadd.f32 %v1156_v14, %v925_v20  ;;  %v1295_v22 = vpop.f32.mrb[7].mxu1  ;;  %v931_v23 = vadd.f32 %v929_v17, %v923_v16 }
 0x2de   : > { %v932_v24 = vadd.f32 %v930_v19, %v926_v21 }
 0x2e0   : > { %v1178_v11 = vpack.c.bf16 %v932_v24, %v931_v23 }
 0x2e2   : > { %1179 = vst [vmem:[%s437_s30] sm:$0xff] %v1178_v11  }
 0x2e3   : > { %1647 = shalt.err (!%p1644_p13)
}
 0x2e4   : > { %s1648_s15 = scalar_lea.hbm %s2204_s24, 128  ;;  %s1652_s6 = scalar_lea.hbm %s2319_s19, 512 }
 0x2e5   : > { %p1649_p9 = scmp.ne.s32.totalorder %s2204_s24, %s1648_s15  ;;  %p1653_p12 = scmp.lt.u32.totalorder %s2204_s24, %s2319_s19 }
 0x2e6   : > { %p1654_p4 = scmp.lt.u32.totalorder %s1652_s6, %s1648_s15  ;;  %p1656_p2 = scmp.lt.u32.totalorder %s1648_s15, %s2204_s24 }
 0x2e7   : > { %p1650_p11 = pnand %p1649_p9, %p2005_p3 }
 0x2e8   : > { %p1655_p8 = por %p1654_p4, %p1653_p12 }
 0x2e9   : > { %p1651_p1 = pneg %p1650_p11 }
 0x2ea   : > { %p1657_p6 = por %p1656_p2, %p1655_p8 }
 0x2ec   : > { %p1658_p0 = pnand %p1657_p6, %p1651_p1 }
 0x2ee   : > { %1661 = shalt.err (!%p1658_p0)
}
 0x2ef   : > { %s1762_s18 = smov 64   ;;  %s1763_s21 = smov 4  }
 0x2f0   : > { %1316 = dma.vmem_to_hbm [thread:$0]  (%p2005_p3), %s2206_s2, 128, %s2204_s24, %s944_s0, %s1762_s18, %s1762_s18, %s1763_s21  }
 0x2f1 PF: > { %s2320_s23 = sld [smem:[#allocation20_spill]]  ;;  %s2321_s7 = sld [smem:[#allocation22_spill]] }
 0x2f2   : > { %p1351_p5 = scmp.ge.s32.totalorder %s1748_s12, 2 }
 0x2f7   : > { %s974_s30 = sand.u32 1, %s2320_s23   ;;  %p2322_p7 = scmp.ne.s32.totalorder %s2321_s7, 0 }
 0x2f8   : > { %s975_s3 = scalar_lea.sflag [#allocation4], %s974_s30 }
 0x2f9   : > { %p1339_p10 = pnand %p1351_p5, %p2322_p7 }
 0x2fb   : > { %1715 = dma.done.wait (!%p1339_p10), %s975_s3, 128  }
 0x2fc   : > { %1717 = vsyncadd (!%p1339_p10), %s975_s3, 4294967168  ;;  %s29_s12 = sadd.s32 1, %s1748_s12   ;;  %s2323_s8 = smov %s2333_s27 }
 0x2fd   : > { %p26_p13 = scmp.ge.s32.totalorder %s29_s12, 6   ;;  %s2324_s20 = sld [smem:[#allocation23_spill]] }
 0x2fe   : > { %s2325_s27 = smov %s1724_s28  ;;  %s2326_s28 = smov %s1728_s29 }
 0x2ff   : > { %s2327_s29 = smov %s2021_s26  ;;  %s2328_s30 = smov %s1740_s10 }
 0x300   : > { %s2329_s9 = smov %s1744_s11  ;;  %s2330_s10 = smov %s2323_s8 }
 0x301   :  { %28 = sbr.rel (!%p26_p13) target bundleno = 20 (0x14), region = 126 }
 0x303   : > { %s2331_s11 = smov %s2324_s20 }
 0x308   :  { %980 = vsyncpa [#allocation3], 1 }
 0x309   :  { %982 = vsyncpa [#allocation3 + $0x1], 1 }
 0x30a   :  { %983 = vsyncpa [#allocation6], 1 }
 0x30b   :  { %985 = vsyncpa [#allocation6 + $0x1], 1 }
 0x30c   :  { %986 = vsyncpa [#allocation9], 1 }
 0x30d   :  { %987 = vsyncpa [#allocation12], 1 }
 0x30e   :  { %988 = vsyncpa [#allocation4], 1 }
 0x30f   :  { %990 = vsyncpa [#allocation4 + $0x1], 1 }

</bundles_post_ra>
